<compile_context>
chip_gen: v5e
topology: v5e:2x2
jax: 0.10.0
libtpu: 0.0.40
codegen_flags: <defaults>
</compile_context>

<pallas_src>
import functools

import jax
import jax.numpy as jnp
from jax.experimental import pallas as pl
from jax.experimental.pallas import tpu as pltpu

LANE = 128  # vreg lane width: hidden/output feature axes are padded to this.


def _round_up(n, m):
    return ((n + m - 1) // m) * m


def _chip_vmem_limit(requested_bytes):
    """Per-chip scoped-VMEM cap: 128 MiB parts (v5e/v6e) get ~112 MiB, v7x's
    64 MiB VMEM gets ~48 MiB; never below the 32 MiB default-ish floor."""
    try:
        phys = int(pltpu.get_tpu_info().vmem_capacity_bytes)
    except Exception:  # non-TPU backend / older runtime: be conservative (v7x)
        phys = 64 << 20
    cap = max(32 << 20, phys - (16 << 20))
    return int(min(max(int(requested_bytes), 32 << 20), cap))


# --------------------------------------------------------------------------- #
# Kernel: fused 4-layer MLP.  Dots run on the MXU (operands bf16 or f32, f32
# accumulation); bias-add + ReLU epilogues stay in f32 (v5e VPU has no bf16).
# --------------------------------------------------------------------------- #
def mlp_kernel(x_ref, w1_ref, b1_ref, w2_ref, b2_ref, w3_ref, b3_ref,
               w4_ref, b4_ref, o_ref):
    wdt = w1_ref.dtype  # matmul operand dtype (bf16 by default, or f32)

    # NOTE: rows beyond B in a ragged final batch tile hold unspecified data.
    # That is fine — rows are independent and Pallas masks them out of the
    # output writeback (wasted, never wrong, work).  Do not "fix" with masking.
    x = x_ref[...].astype(wdt)

    h = jnp.dot(x, w1_ref[...], preferred_element_type=jnp.float32)
    h = jnp.maximum(h + b1_ref[...], 0.0)

    h = jnp.dot(h.astype(wdt), w2_ref[...], preferred_element_type=jnp.float32)
    h = jnp.maximum(h + b2_ref[...], 0.0)

    h = jnp.dot(h.astype(wdt), w3_ref[...], preferred_element_type=jnp.float32)
    h = jnp.maximum(h + b3_ref[...], 0.0)

    out = jnp.dot(h.astype(wdt), w4_ref[...],
                  preferred_element_type=jnp.float32) + b4_ref[...]
    # Store only the real output column(s); lane-padded columns never reach HBM.
    o_ref[...] = out[:, :o_ref.shape[1]].astype(o_ref.dtype)


# --------------------------------------------------------------------------- #
# Parameter handling
# --------------------------------------------------------------------------- #
def init_params(key, input_dim, hidden_dim, output_dim):
    """PyTorch-layout params: w_i is (out_features, in_features), b_i is
    (out_features,), initialized U(-1/sqrt(fan_in), 1/sqrt(fan_in)) like
    nn.Linear's default."""
    dims = [(input_dim, hidden_dim), (hidden_dim, hidden_dim),
            (hidden_dim, hidden_dim), (hidden_dim, output_dim)]
    params = {}
    for idx, (fan_in, fan_out) in enumerate(dims, start=1):
        key, kw, kb = jax.random.split(key, 3)
        bound = 1.0 / (fan_in ** 0.5)
        params[f"w{idx}"] = jax.random.uniform(
            kw, (fan_out, fan_in), jnp.float32, -bound, bound)
        params[f"b{idx}"] = jax.random.uniform(
            kb, (fan_out,), jnp.float32, -bound, bound)
    return params


def prepare_params(params, compute_dtype=jnp.bfloat16):
    """Transpose torch-layout weights to (in, out) and lane-pad feature axes.

    * Layer-1's contraction axis stays UNPADDED (= input_dim) so x can be fed
      straight from HBM with no wrapper pad/copy pass.
    * Hidden/output axes are zero-padded to multiples of 128 lanes.  Padding is
      exact: padded hidden units come out of ReLU as exactly 0 and padded output
      columns are never stored (the kernel slices before the store).
    * Matmul operands (weights) are cast to `compute_dtype` (bf16 default —
      halves their HBM read); biases stay f32 for the f32 epilogue.
      NOTE: with bf16 weights, x is also cast to bf16 *inside the kernel*; the
      error scales with activation magnitude — pass compute_dtype=jnp.float32
      if full f32 accuracy is required.
    """
    prepared = {}
    for idx in range(1, 5):
        w = jnp.asarray(params[f"w{idx}"]).T            # (in_features, out_features)
        b = jnp.asarray(params[f"b{idx}"])              # (out_features,)
        fan_in, fan_out = w.shape
        in_p = fan_in if idx == 1 else _round_up(fan_in, LANE)
        out_p = _round_up(fan_out, LANE)
        w = jnp.pad(w, ((0, in_p - fan_in), (0, out_p - fan_out)))
        b = jnp.pad(b, (0, out_p - fan_out))
        prepared[f"w{idx}"] = w.astype(compute_dtype)
        prepared[f"b{idx}"] = b.reshape(1, out_p).astype(jnp.float32)
    return prepared


# --------------------------------------------------------------------------- #
# Forward wrapper
# --------------------------------------------------------------------------- #
@functools.partial(jax.jit, static_argnames=("out_dim", "block_b"))
def linear_regression_forward(x, prepared, *, out_dim=1, block_b=None):
    """x: [B, input_dim] (f32 or bf16 — read from HBM as-is).  prepared: output
    of prepare_params()."""
    B, in_dim = x.shape
    assert prepared["w1"].shape[0] == in_dim, "input_dim mismatch with prepare_params"
    hid_pad = prepared["w1"].shape[1]
    out_pad = prepared["w4"].shape[1]

    if block_b is None:
        if B <= 32:
            block_b = B  # tiny batch: one full-batch tile (block == full dim is legal)
        else:
            # >=2 balanced tiles so v7x's second TensorCore gets work; big tiles
            # amortize the ~0.35us/step overhead; multiple of 16 keeps bf16
            # sublane packing; cap at 2048 rows (a few MiB VMEM at 128-wide feats).
            block_b = min(2048, _round_up(pl.cdiv(B, 2), 16))
    grid = (pl.cdiv(B, block_b),)

    param_bytes = sum(int(v.size) * v.dtype.itemsize for v in prepared.values())

    # VMEM: double-buffered x/out tiles + single-buffered params (Buffered(1))
    # + f32 intermediates (budget generously).
    tile_bytes = block_b * (in_dim * x.dtype.itemsize + out_dim * 4)
    est_vmem = 2 * tile_bytes + param_bytes + 4 * block_b * hid_pad * 4
    vmem_limit = _chip_vmem_limit(est_vmem + (8 << 20))

    # Real traffic / flops (post-shrink) so XLA doesn't over-serialize around us.
    flops = 2 * B * (in_dim * hid_pad + 2 * hid_pad * hid_pad + hid_pad * out_pad)
    bytes_accessed = (B * in_dim * x.dtype.itemsize + param_bytes + B * out_dim * 4)
    cost = pl.CostEstimate(flops=flops, transcendentals=0,
                           bytes_accessed=bytes_accessed)

    def x_map(i):
        return (i, 0)

    def const_map(i):
        return (0, 0)

    # x fed straight from HBM, unpadded: last block dim == full array dim is legal.
    in_specs = [pl.BlockSpec((block_b, in_dim), x_map)]
    for idx in range(1, 5):
        w = prepared[f"w{idx}"]
        b = prepared[f"b{idx}"]
        # Constant index_map -> fetched once and resident across batch tiles;
        # Buffered(1) drops the default 2x double-buffer VMEM reservation for
        # these never-changing blocks.
        in_specs.append(pl.BlockSpec(w.shape, const_map,
                                     pipeline_mode=pl.Buffered(1)))
        in_specs.append(pl.BlockSpec(b.shape, const_map,
                                     pipeline_mode=pl.Buffered(1)))

    out_spec = pl.BlockSpec((block_b, out_dim), x_map)

    return pl.pallas_call(
        mlp_kernel,
        out_shape=jax.ShapeDtypeStruct((B, out_dim), jnp.float32),
        grid_spec=pltpu.PrefetchScalarGridSpec(
            num_scalar_prefetch=0,
            grid=grid,
            in_specs=in_specs,
            out_specs=out_spec,
        ),
        compiler_params=pltpu.CompilerParams(
            dimension_semantics=("parallel",),   # batch tiles independent (v7x megacore)
            vmem_limit_bytes=vmem_limit,
        ),
        cost_estimate=cost,
    )(x, prepared["w1"], prepared["b1"], prepared["w2"], prepared["b2"],
      prepared["w3"], prepared["b3"], prepared["w4"], prepared["b4"])


# --------------------------------------------------------------------------- #
# Pure-JAX reference (unpadded, torch-layout params)
# --------------------------------------------------------------------------- #
def reference_forward(x, params):
    h = jnp.maximum(x @ params["w1"].T + params["b1"], 0.0)
    h = jnp.maximum(h @ params["w2"].T + params["b2"], 0.0)
    h = jnp.maximum(h @ params["w3"].T + params["b3"], 0.0)
    return h @ params["w4"].T + params["b4"]


if __name__ == "__main__":
    batch, input_dim, hidden_dim, output_dim = 8, 16, 32, 1

    key = jax.random.PRNGKey(0)
    key, kx = jax.random.split(key)
    x = jax.random.normal(kx, (batch, input_dim), jnp.float32)
    params = init_params(key, input_dim, hidden_dim, output_dim)
    ref = reference_forward(x, params)

    # --- f32 operand path, single tile: padding math is exact ----------------
    prep_f32 = prepare_params(params, jnp.float32)
    out = jax.block_until_ready(
        linear_regression_forward(x, prep_f32, out_dim=output_dim))
    assert out.shape == (batch, output_dim)
    assert jnp.allclose(out, ref, atol=1e-5, rtol=1e-5), "f32 path mismatch"

    # --- multi-step ragged batch grid (>=2 parallel tiles, partial last tile) -
    key, kx2 = jax.random.split(key)
    x2 = jax.random.normal(kx2, (200, input_dim), jnp.float32)
    ref2 = reference_forward(x2, params)
    out2 = jax.block_until_ready(
        linear_regression_forward(x2, prep_f32, out_dim=output_dim))
    assert out2.shape == (200, output_dim)
    assert jnp.allclose(out2, ref2, atol=1e-5, rtol=1e-5), "ragged-batch mismatch"

    # --- default bf16 operand path (f32 x read from HBM, in-kernel cast,
    #     f32 accumulate + epilogue) --------------------------------------------
    prep_bf16 = prepare_params(params)  # bf16 weights by default
    out_bf16 = jax.block_until_ready(
        linear_regression_forward(x, prep_bf16, out_dim=output_dim))
    assert out_bf16.shape == (batch, output_dim)
    assert jnp.allclose(out_bf16, ref, atol=5e-2, rtol=5e-2), "bf16 path mismatch"

    print("KERNEL_OK")
</pallas_src>

<mosaic_0001>
module attributes {stable_mosaic.version = 11 : i64} {
  func.func @mlp_kernel(%arg0: i32, %arg1: memref<8x16xf32, #tpu.memory_space<vmem>>, %arg2: memref<16x128xf32, #tpu.memory_space<vmem>>, %arg3: memref<1x128xf32, #tpu.memory_space<vmem>>, %arg4: memref<128x128xf32, #tpu.memory_space<vmem>>, %arg5: memref<1x128xf32, #tpu.memory_space<vmem>>, %arg6: memref<128x128xf32, #tpu.memory_space<vmem>>, %arg7: memref<1x128xf32, #tpu.memory_space<vmem>>, %arg8: memref<128x128xf32, #tpu.memory_space<vmem>>, %arg9: memref<1x128xf32, #tpu.memory_space<vmem>>, %arg10: memref<8x1xf32, #tpu.memory_space<vmem>>) attributes {dimension_semantics = [#tpu.dimension_semantics<parallel>], iteration_bounds = array<i64: 1>, scalar_prefetch = 0 : i64, scratch_operands = 0 : i64, tpu.core_type = #tpu.core_type<tc>, window_params = [{transform_indices = @transform_0, window_bounds = array<i64: 8, 16>}, {pipeline_mode = #tpu.pipeline_mode<synchronous>, transform_indices = @transform_1, window_bounds = array<i64: 16, 128>}, {pipeline_mode = #tpu.pipeline_mode<synchronous>, transform_indices = @transform_2, window_bounds = array<i64: 1, 128>}, {pipeline_mode = #tpu.pipeline_mode<synchronous>, transform_indices = @transform_3, window_bounds = array<i64: 128, 128>}, {pipeline_mode = #tpu.pipeline_mode<synchronous>, transform_indices = @transform_4, window_bounds = array<i64: 1, 128>}, {pipeline_mode = #tpu.pipeline_mode<synchronous>, transform_indices = @transform_5, window_bounds = array<i64: 128, 128>}, {pipeline_mode = #tpu.pipeline_mode<synchronous>, transform_indices = @transform_6, window_bounds = array<i64: 1, 128>}, {pipeline_mode = #tpu.pipeline_mode<synchronous>, transform_indices = @transform_7, window_bounds = array<i64: 128, 128>}, {pipeline_mode = #tpu.pipeline_mode<synchronous>, transform_indices = @transform_8, window_bounds = array<i64: 1, 128>}, {transform_indices = @transform_9, window_bounds = array<i64: 8, 1>}]} {
    %c0 = arith.constant 0 : index
    %c0_0 = arith.constant 0 : index
    %0 = vector.load %arg1[%c0, %c0_0] : memref<8x16xf32, #tpu.memory_space<vmem>>, vector<8x16xf32>
    %c0_1 = arith.constant 0 : index
    %c0_2 = arith.constant 0 : index
    %1 = vector.load %arg2[%c0_1, %c0_2] : memref<16x128xf32, #tpu.memory_space<vmem>>, vector<16x128xf32>
    %cst = arith.constant dense<0.000000e+00> : vector<8x128xf32>
    %2 = tpu.matmul %0, %1, %cst {dimension_numbers = #tpu.dot_dimension_numbers<[1], [0], [0], [1], [0, 0, 1, 1], [], []>} : vector<8x16xf32>, vector<16x128xf32>, vector<8x128xf32> -> vector<8x128xf32>
    %c0_3 = arith.constant 0 : index
    %c0_4 = arith.constant 0 : index
    %3 = vector.load %arg3[%c0_3, %c0_4] : memref<1x128xf32, #tpu.memory_space<vmem>>, vector<1x128xf32>
    %4 = vector.broadcast %3 : vector<1x128xf32> to vector<8x128xf32>
    %5 = arith.addf %2, %4 : vector<8x128xf32>
    %cst_5 = arith.constant 0.000000e+00 : f32
    %6 = vector.broadcast %cst_5 : f32 to vector<8x128xf32>
    %7 = arith.maximumf %5, %6 : vector<8x128xf32>
    %c0_6 = arith.constant 0 : index
    %c0_7 = arith.constant 0 : index
    %8 = vector.load %arg4[%c0_6, %c0_7] : memref<128x128xf32, #tpu.memory_space<vmem>>, vector<128x128xf32>
    %cst_8 = arith.constant dense<0.000000e+00> : vector<8x128xf32>
    %9 = tpu.matmul %7, %8, %cst_8 {dimension_numbers = #tpu.dot_dimension_numbers<[1], [0], [0], [1], [0, 0, 1, 1], [], []>} : vector<8x128xf32>, vector<128x128xf32>, vector<8x128xf32> -> vector<8x128xf32>
    %c0_9 = arith.constant 0 : index
    %c0_10 = arith.constant 0 : index
    %10 = vector.load %arg5[%c0_9, %c0_10] : memref<1x128xf32, #tpu.memory_space<vmem>>, vector<1x128xf32>
    %11 = vector.broadcast %10 : vector<1x128xf32> to vector<8x128xf32>
    %12 = arith.addf %9, %11 : vector<8x128xf32>
    %cst_11 = arith.constant 0.000000e+00 : f32
    %13 = vector.broadcast %cst_11 : f32 to vector<8x128xf32>
    %14 = arith.maximumf %12, %13 : vector<8x128xf32>
    %c0_12 = arith.constant 0 : index
    %c0_13 = arith.constant 0 : index
    %15 = vector.load %arg6[%c0_12, %c0_13] : memref<128x128xf32, #tpu.memory_space<vmem>>, vector<128x128xf32>
    %cst_14 = arith.constant dense<0.000000e+00> : vector<8x128xf32>
    %16 = tpu.matmul %14, %15, %cst_14 {dimension_numbers = #tpu.dot_dimension_numbers<[1], [0], [0], [1], [0, 0, 1, 1], [], []>} : vector<8x128xf32>, vector<128x128xf32>, vector<8x128xf32> -> vector<8x128xf32>
    %c0_15 = arith.constant 0 : index
    %c0_16 = arith.constant 0 : index
    %17 = vector.load %arg7[%c0_15, %c0_16] : memref<1x128xf32, #tpu.memory_space<vmem>>, vector<1x128xf32>
    %18 = vector.broadcast %17 : vector<1x128xf32> to vector<8x128xf32>
    %19 = arith.addf %16, %18 : vector<8x128xf32>
    %cst_17 = arith.constant 0.000000e+00 : f32
    %20 = vector.broadcast %cst_17 : f32 to vector<8x128xf32>
    %21 = arith.maximumf %19, %20 : vector<8x128xf32>
    %c0_18 = arith.constant 0 : index
    %c0_19 = arith.constant 0 : index
    %22 = vector.load %arg8[%c0_18, %c0_19] : memref<128x128xf32, #tpu.memory_space<vmem>>, vector<128x128xf32>
    %cst_20 = arith.constant dense<0.000000e+00> : vector<8x128xf32>
    %23 = tpu.matmul %21, %22, %cst_20 {dimension_numbers = #tpu.dot_dimension_numbers<[1], [0], [0], [1], [0, 0, 1, 1], [], []>} : vector<8x128xf32>, vector<128x128xf32>, vector<8x128xf32> -> vector<8x128xf32>
    %c0_21 = arith.constant 0 : index
    %c0_22 = arith.constant 0 : index
    %24 = vector.load %arg9[%c0_21, %c0_22] : memref<1x128xf32, #tpu.memory_space<vmem>>, vector<1x128xf32>
    %25 = vector.broadcast %24 : vector<1x128xf32> to vector<8x128xf32>
    %26 = arith.addf %23, %25 : vector<8x128xf32>
    %27 = vector.extract_strided_slice %26 {offsets = [0, 0], sizes = [8, 1], strides = [1, 1]} : vector<8x128xf32> to vector<8x1xf32>
    %c0_23 = arith.constant 0 : index
    %c0_24 = arith.constant 0 : index
    %28 = vector.load %arg10[%c0_23, %c0_24] : memref<8x1xf32, #tpu.memory_space<vmem>>, vector<8x1xf32>
    tpu.vector_store %arg10[%c0_23, %c0_24], %27 {strides = array<i32>} : memref<8x1xf32, #tpu.memory_space<vmem>>, vector<8x1xf32>,
    return
  }
  func.func @transform_0(%arg0: i32) -> (i32, i32) {
    %c0_i32 = arith.constant 0 : i32
    %c0_i32_0 = arith.constant 0 : i32
    return %arg0, %c0_i32 : i32, i32
  }
  func.func @transform_1(%arg0: i32) -> (i32, i32) {
    %c0_i32 = arith.constant 0 : i32
    %c0_i32_0 = arith.constant 0 : i32
    %c0_i32_1 = arith.constant 0 : i32
    return %c0_i32, %c0_i32_0 : i32, i32
  }
  func.func @transform_2(%arg0: i32) -> (i32, i32) {
    %c0_i32 = arith.constant 0 : i32
    %c0_i32_0 = arith.constant 0 : i32
    %c0_i32_1 = arith.constant 0 : i32
    return %c0_i32, %c0_i32_0 : i32, i32
  }
  func.func @transform_3(%arg0: i32) -> (i32, i32) {
    %c0_i32 = arith.constant 0 : i32
    %c0_i32_0 = arith.constant 0 : i32
    %c0_i32_1 = arith.constant 0 : i32
    return %c0_i32, %c0_i32_0 : i32, i32
  }
  func.func @transform_4(%arg0: i32) -> (i32, i32) {
    %c0_i32 = arith.constant 0 : i32
    %c0_i32_0 = arith.constant 0 : i32
    %c0_i32_1 = arith.constant 0 : i32
    return %c0_i32, %c0_i32_0 : i32, i32
  }
  func.func @transform_5(%arg0: i32) -> (i32, i32) {
    %c0_i32 = arith.constant 0 : i32
    %c0_i32_0 = arith.constant 0 : i32
    %c0_i32_1 = arith.constant 0 : i32
    return %c0_i32, %c0_i32_0 : i32, i32
  }
  func.func @transform_6(%arg0: i32) -> (i32, i32) {
    %c0_i32 = arith.constant 0 : i32
    %c0_i32_0 = arith.constant 0 : i32
    %c0_i32_1 = arith.constant 0 : i32
    return %c0_i32, %c0_i32_0 : i32, i32
  }
  func.func @transform_7(%arg0: i32) -> (i32, i32) {
    %c0_i32 = arith.constant 0 : i32
    %c0_i32_0 = arith.constant 0 : i32
    %c0_i32_1 = arith.constant 0 : i32
    return %c0_i32, %c0_i32_0 : i32, i32
  }
  func.func @transform_8(%arg0: i32) -> (i32, i32) {
    %c0_i32 = arith.constant 0 : i32
    %c0_i32_0 = arith.constant 0 : i32
    %c0_i32_1 = arith.constant 0 : i32
    return %c0_i32, %c0_i32_0 : i32, i32
  }
  func.func @transform_9(%arg0: i32) -> (i32, i32) {
    %c0_i32 = arith.constant 0 : i32
    %c0_i32_0 = arith.constant 0 : i32
    return %arg0, %c0_i32 : i32, i32
  }
}

</mosaic_0001>

<bundles_post_ra>
// kernel: linear_regression_forward.1
= control target key start
LH: loop header
LB: loop body
LE: loop exit
PB: predicated region body
PF: predicated region fallthrough
CT: control target
= control target key end

     0   :  { %14 = vsyncpa [#allocation3], 0  ;;  %s551_s0 = inlined_call_operand.hbm [shape: f32[8,16], index: 0, kind: input, shape index: {}]   ;;  %s552_s1 = inlined_call_operand.hbm [shape: f32[16,128], index: 1, kind: input, shape index: {}]   ;;  %s553_s2 = inlined_call_operand.hbm [shape: f32[1,128], index: 2, kind: input, shape index: {}]   ;;  %s554_s3 = inlined_call_operand.hbm [shape: f32[128,128], index: 3, kind: input, shape index: {}]   ;;  %s555_s4 = inlined_call_operand.vmem [shape: f32[1,128], index: 4, kind: input, shape index: {}]   ;;  %s556_s5 = inlined_call_operand.hbm [shape: f32[128,128], index: 5, kind: input, shape index: {}]   ;;  %s557_s6 = inlined_call_operand.vmem [shape: f32[1,128], index: 6, kind: input, shape index: {}]   ;;  %s558_s7 = inlined_call_operand.hbm [shape: f32[128,128], index: 7, kind: input, shape index: {}]   ;;  %s559_s8 = inlined_call_operand.vmem [shape: f32[1,128], index: 8, kind: input, shape index: {}]   ;;  %s560_s9 = inlined_call_operand.vmem [shape: f32[8,1], index: 9, kind: output, shape index: {}]  }
   0x1   :  { %15 = vsyncpa [#allocation5], 0 }
   0x2   :  { %16 = vsyncpa [#allocation8], 0  ;;  %s33_s11 = sshll.u32 %s552_s1, 4  ;;  %s34_s11 = int_to_ptr.hbm [resolvable:$true] %s33_s11 }
   0x3   :  { %17 = vsyncpa [#allocation11], 0  ;;  %s451_s12 = smov [#allocation4]   ;;  %s57_s16 = sshll.u32 %s554_s3, 4  ;;  %s58_s16 = int_to_ptr.hbm [resolvable:$true] %s57_s16 }
   0x4   :  { %s35_s13 = sshll.u32 %s451_s12, 4  ;;  %s452_s17 = smov 128   ;;  %s36_s13 = int_to_ptr.vmem [resolvable:$true] %s35_s13 }
   0x5   :  { %s453_s18 = smov 8   ;;  %s454_s19 = smov [#allocation7]  }
   0x6   :  { %41 = dma.hbm_to_vmem [thread:$0]  %s34_s11, 256, %s36_s13, [#allocation5], %s452_s17, %s452_s17, %s453_s18  }
   0x7   :  { %s59_s20 = sshll.u32 %s454_s19, 4  ;;  %s23_s22 = sshll.u32 %s551_s0, 4  ;;  %s60_s20 = int_to_ptr.vmem [resolvable:$true] %s59_s20  ;;  %s24_s22 = int_to_ptr.hbm [resolvable:$true] %s23_s22 }
   0x8   :  { %65 = dma.hbm_to_vmem [thread:$0]  %s58_s16, 2048, %s60_s20, [#allocation8], %s452_s17, %s452_s17, %s453_s18  }
   0x9   :  { %s47_s24 = sshll.u32 %s553_s2, 4  ;;  %s455_s25 = smov [#allocation2]   ;;  %s48_s24 = int_to_ptr.hbm [resolvable:$true] %s47_s24 }
   0xa   :  { %s25_s26 = sshll.u32 %s455_s25, 4  ;;  %s456_s27 = smov [#allocation6]   ;;  %s26_s26 = int_to_ptr.vmem [resolvable:$true] %s25_s26 }
   0xb   :  { %28 = dma.hbm_to_vmem [thread:$0]  %s24_s22, 128, %s26_s26, [#allocation3]  }
   0xc   :  { %s49_s28 = sshll.u32 %s456_s27, 4  ;;  %s72_s0 = sshll.u32 %s556_s5, 4  ;;  %s50_s28 = int_to_ptr.vmem [resolvable:$true] %s49_s28  ;;  %s73_s0 = int_to_ptr.hbm [resolvable:$true] %s72_s0 }
   0xd   :  { %52 = dma.hbm_to_vmem [thread:$0]  %s48_s24, 16, %s50_s28, [#allocation5]  }
   0xe   :  { %s87_s12 = sshll.u32 %s558_s7, 4  ;;  %s457_s13 = smov [#allocation9]   ;;  %s88_s12 = int_to_ptr.hbm [resolvable:$true] %s87_s12 }
   0xf   :  { %s74_s2 = sshll.u32 %s457_s13, 4  ;;  %s458_s14 = smov [#allocation10]   ;;  %s75_s2 = int_to_ptr.vmem [resolvable:$true] %s74_s2 }
  0x10   :  { %80 = dma.hbm_to_vmem [thread:$0]  %s73_s0, 2048, %s75_s2, [#allocation8], %s452_s17, %s452_s17, %s453_s18  }
  0x11   :  { %s89_s15 = sshll.u32 %s458_s14, 4  ;;  %s90_s15 = int_to_ptr.vmem [resolvable:$true] %s89_s15 }
  0x12   :  { %95 = dma.hbm_to_vmem [thread:$0]  %s88_s12, 2048, %s90_s15, [#allocation11], %s452_s17, %s452_s17, %s453_s18  }
  0x13   :  { %443 = dma.done.wait [#allocation3], 128  }
  0x14   :  { %444 = vsyncadd [#allocation3], 4294967168 }
  0x15   :  { %445 = dma.done.wait [#allocation5], 272  }
  0x16   :  { %446 = vsyncadd [#allocation5], 4294967024 }
  0x17   :  { %447 = dma.done.wait [#allocation8], 4096  }
  0x18   :  { %448 = vsyncadd [#allocation8], 4294963200 }
  0x19   :  { %449 = dma.done.wait [#allocation11], 2048  }
  0x1a   :  { %450 = vsyncadd [#allocation11], 4294965248  ;;  %v124_v0 = vld [vmem:[#allocation4 + $0x8] sm:$0xff]  ;;  %v123_v1 = vld [vmem:[#allocation4] sm:$0xff]  ;;  %vm129_vm0 = vcmask 130048   ;;  %vm276_vm1 = vcmask 7168  }
  0x1b   :  { %147 = vmatpush.msra.mxu0 %v124_v0  ;;  %v122_v2 = vld [vmem:[#allocation2] sm:$0xff]  ;;  %v169_v3 = vld [vmem:[#allocation7 + $0x78] sm:$0xff]  ;;  %v168_v4 = vld [vmem:[#allocation7 + $0x70] sm:$0xff] }
  0x1c   :  { %174 = vmatpush.msra.mxu1 %v169_v3  ;;  %v167_v5 = vld [vmem:[#allocation7 + $0x68] sm:$0xff]  ;;  %v166_v6 = vld [vmem:[#allocation7 + $0x60] sm:$0xff]  ;;  %v165_v7 = vld [vmem:[#allocation7 + $0x58] sm:$0xff] }
  0x1d   :  { %148 = vmatpush.msra.mxu0 %v123_v1  ;;  %v164_v8 = vld [vmem:[#allocation7 + $0x50] sm:$0xff]  ;;  %v163_v9 = vld [vmem:[#allocation7 + $0x48] sm:$0xff]  ;;  %v162_v10 = vld [vmem:[#allocation7 + $0x40] sm:$0xff] }
  0x1e   :  { %286 = vmatmul.msk.f32.vlgmr.msra.gmra.mxu0 %vm129_vm0, %v122_v2  ;;  %175 = vmatpush.msra.mxu1 %v168_v4  ;;  %v161_v11 = vld [vmem:[#allocation7 + $0x38] sm:$0xff]  ;;  %v160_v12 = vld [vmem:[#allocation7 + $0x30] sm:$0xff]  ;;  %v159_v13 = vld [vmem:[#allocation7 + $0x28] sm:$0xff] }
  0x1f   :  { %v158_v14 = vld [vmem:[#allocation7 + $0x20] sm:$0xff]  ;;  %v157_v15 = vld [vmem:[#allocation7 + $0x18] sm:$0xff]  ;;  %v156_v16 = vld [vmem:[#allocation7 + $0x10] sm:$0xff] }
  0x20   :  { %176 = vmatpush.msra.mxu1 %v167_v5  ;;  %v155_v17 = vld [vmem:[#allocation7 + $0x8] sm:$0xff]  ;;  %v154_v18 = vld [vmem:[#allocation7] sm:$0xff]  ;;  %v210_v19 = vld [vmem:[#allocation9 + $0x78] sm:$0xff] }
  0x21   :  { %v209_v20 = vld [vmem:[#allocation9 + $0x70] sm:$0xff]  ;;  %215 = vmatpush.msra.mxu2 %v210_v19  ;;  %v208_v21 = vld [vmem:[#allocation9 + $0x68] sm:$0xff]  ;;  %v207_v22 = vld [vmem:[#allocation9 + $0x60] sm:$0xff] }
  0x22   :  { %177 = vmatpush.msra.mxu1 %v166_v6  ;;  %v206_v23 = vld [vmem:[#allocation9 + $0x58] sm:$0xff]  ;;  %v205_v24 = vld [vmem:[#allocation9 + $0x50] sm:$0xff]  ;;  %v204_v25 = vld [vmem:[#allocation9 + $0x48] sm:$0xff] }
  0x23   :  { %216 = vmatpush.msra.mxu2 %v209_v20  ;;  %v203_v26 = vld [vmem:[#allocation9 + $0x40] sm:$0xff]  ;;  %v202_v27 = vld [vmem:[#allocation9 + $0x38] sm:$0xff]  ;;  %v201_v28 = vld [vmem:[#allocation9 + $0x30] sm:$0xff] }
  0x24   :  { %178 = vmatpush.msra.mxu1 %v165_v7  ;;  %v200_v29 = vld [vmem:[#allocation9 + $0x28] sm:$0xff]  ;;  %v199_v30 = vld [vmem:[#allocation9 + $0x20] sm:$0xff]  ;;  %v198_v31 = vld [vmem:[#allocation9 + $0x18] sm:$0xff] }
  0x25   :  { %217 = vmatpush.msra.mxu2 %v208_v21  ;;  %v295_v32 = vld [vmem:[#allocation6] ss:$0 sm:$0xff]  ;;  %v197_v36 = vld [vmem:[#allocation9 + $0x10] sm:$0xff]  ;;  %v196_v37 = vld [vmem:[#allocation9 + $0x8] sm:$0xff] }
  0x26   :  { %179 = vmatpush.msra.mxu1 %v164_v8  ;;  %v195_v38 = vld [vmem:[#allocation9] sm:$0xff]  ;;  %v251_v39 = vld [vmem:[#allocation10 + $0x78] sm:$0xff]  ;;  %v250_v40 = vld [vmem:[#allocation10 + $0x70] sm:$0xff] }
  0x27   :  { %218 = vmatpush.msra.mxu2 %v207_v22  ;;  %256 = vmatpush.msra.mxu3 %v251_v39  ;;  %v249_v41 = vld [vmem:[#allocation10 + $0x68] sm:$0xff]  ;;  %v248_v42 = vld [vmem:[#allocation10 + $0x60] sm:$0xff]  ;;  %v247_v43 = vld [vmem:[#allocation10 + $0x58] sm:$0xff] }
  0x28   :  { %180 = vmatpush.msra.mxu1 %v163_v9  ;;  %v246_v44 = vld [vmem:[#allocation10 + $0x50] sm:$0xff]  ;;  %v245_v45 = vld [vmem:[#allocation10 + $0x48] sm:$0xff]  ;;  %v244_v46 = vld [vmem:[#allocation10 + $0x40] sm:$0xff] }
  0x29   :  { %219 = vmatpush.msra.mxu2 %v206_v23  ;;  %257 = vmatpush.msra.mxu3 %v250_v40  ;;  %v243_v47 = vld [vmem:[#allocation10 + $0x38] sm:$0xff]  ;;  %v242_v48 = vld [vmem:[#allocation10 + $0x30] sm:$0xff]  ;;  %v241_v49 = vld [vmem:[#allocation10 + $0x28] sm:$0xff] }
  0x2a   :  { %181 = vmatpush.msra.mxu1 %v162_v10  ;;  %v240_v50 = vld [vmem:[#allocation10 + $0x20] sm:$0xff]  ;;  %v239_v51 = vld [vmem:[#allocation10 + $0x18] sm:$0xff]  ;;  %v238_v56 = vld [vmem:[#allocation10 + $0x10] sm:$0xff] }
  0x2b   :  { %220 = vmatpush.msra.mxu2 %v205_v24  ;;  %258 = vmatpush.msra.mxu3 %v249_v41  ;;  %v296_v52 = vld [vmem:[%s555_s4] ss:$0 sm:$0xff]  ;;  %v237_v57 = vld [vmem:[#allocation10 + $0x8] sm:$0xff] }
  0x2c   :  { %182 = vmatpush.msra.mxu1 %v161_v11  ;;  %v236_v58 = vld [vmem:[#allocation10] sm:$0xff] }
  0x2d   :  { %221 = vmatpush.msra.mxu2 %v204_v25  ;;  %259 = vmatpush.msra.mxu3 %v248_v42  ;;  %v297_v59 = vld [vmem:[%s557_s6] ss:$0 sm:$0xff] }
  0x2e   :  { %183 = vmatpush.msra.mxu1 %v160_v12  ;;  %v298_v63 = vld [vmem:[%s559_s8] ss:$0 sm:$0xff] }
  0x2f   :  { %222 = vmatpush.msra.mxu2 %v203_v26  ;;  %260 = vmatpush.msra.mxu3 %v247_v43 }
  0x30   :  { %184 = vmatpush.msra.mxu1 %v159_v13 }
  0x31   :  { %223 = vmatpush.msra.mxu2 %v202_v27  ;;  %261 = vmatpush.msra.mxu3 %v246_v44 }
  0x32   :  { %185 = vmatpush.msra.mxu1 %v158_v14 }
  0x33   :  { %224 = vmatpush.msra.mxu2 %v201_v28  ;;  %262 = vmatpush.msra.mxu3 %v245_v45 }
  0x34   :  { %186 = vmatpush.msra.mxu1 %v157_v15 }
  0x35   :  { %225 = vmatpush.msra.mxu2 %v200_v29  ;;  %263 = vmatpush.msra.mxu3 %v244_v46 }
  0x36   :  { %187 = vmatpush.msra.mxu1 %v156_v16 }
  0x37   :  { %226 = vmatpush.msra.mxu2 %v199_v30  ;;  %264 = vmatpush.msra.mxu3 %v243_v47 }
  0x38   :  { %188 = vmatpush.msra.mxu1 %v155_v17 }
  0x39   :  { %227 = vmatpush.msra.mxu2 %v198_v31  ;;  %265 = vmatpush.msra.mxu3 %v242_v48 }
  0x3a   :  { %189 = vmatpush.msra.mxu1 %v154_v18 }
  0x3b   :  { %228 = vmatpush.msra.mxu2 %v197_v36  ;;  %266 = vmatpush.msra.mxu3 %v241_v49 }
  0x3d   :  { %229 = vmatpush.msra.mxu2 %v196_v37  ;;  %267 = vmatpush.msra.mxu3 %v240_v50 }
  0x3f   :  { %230 = vmatpush.msra.mxu2 %v195_v38  ;;  %268 = vmatpush.msra.mxu3 %v239_v51 }
  0x41   :  { %269 = vmatpush.msra.mxu3 %v238_v56 }
  0x43   :  { %270 = vmatpush.msra.mxu3 %v237_v57 }
  0x45   :  { %271 = vmatpush.msra.mxu3 %v236_v58 }
  0x9b   :  { %v150_v33 = vpop.f32.mrf.mxu0 }
  0x9c   :  { %v151_v34 = vadd.f32 %v295_v32, %v150_v33 }
  0x9e   :  { %v153_v35 = vmax.f32 %v151_v34, 0.0 }
  0xa0   :  { %190 = vmatmul.f32.vlgmr.msra.gmra.mxu1 %v153_v35 }
 0x11d   :  { %v191_v53 = vpop.f32.mrf.mxu1 }
 0x11e   :  { %v192_v54 = vadd.f32 %v296_v52, %v191_v53 }
 0x120   :  { %v194_v55 = vmax.f32 %v192_v54, 0.0 }
 0x122   :  { %231 = vmatmul.f32.vlgmr.msra.gmra.mxu2 %v194_v55 }
 0x1a5   :  { %v232_v60 = vpop.f32.mrf.mxu2 }
 0x1a6   :  { %v233_v61 = vadd.f32 %v297_v59, %v232_v60 }
 0x1a8   :  { %v235_v62 = vmax.f32 %v233_v61, 0.0 }
 0x1aa   :  { %272 = vmatmul.f32.vlgmr.msra.gmra.mxu3 %v235_v62 }
 0x22d   :  { %v273_v0 = vpop.f32.mrf.mxu3 }
 0x22e   :  { %v274_v1 = vadd.f32 %v298_v63, %v273_v0 }
 0x230   :  { %277 = vst.msk [vmem:[%s560_s9] sm:$0xff] %vm276_vm1, %v274_v1 }
 0x231   :  { %282 = vsyncpa [#allocation3], 1 }
 0x232   :  { %283 = vsyncpa [#allocation5], 1 }
 0x233   :  { %284 = vsyncpa [#allocation8], 1 }
 0x234   :  { %285 = vsyncpa [#allocation11], 1 }

</bundles_post_ra>
